<compile_context>
chip_gen: v6e
topology: v6e:2x2x1
jax: 0.10.0
libtpu: 0.0.40
codegen_flags: <defaults>
</compile_context>

<pallas_src>
import jax
import jax.numpy as jnp
from jax.experimental import pallas as pl
from jax.experimental.pallas import tpu as pltpu

INPUT_SIZE = 46
HIDDEN_SIZE = 32
NUM_CLASSES = 8

_MIN_PALLAS_BATCH = 512          # below this, plain XLA wins (launch/step overhead dominates)
_SAFE_VMEM_BYTES = 48 * 1024 * 1024   # <= v7x's 64 MiB physical VMEM, with headroom


def _round_up(n, m):
    return ((n + m - 1) // m) * m


def _choose_tb(B, block_b, x_itemsize):
    """Pick the batch tile: multiple of 16, >=2 grid steps when possible, VMEM-capped."""
    if B <= 16:
        # Single whole-array block (block dims == array dims is always legal).
        return B
    # >= 2 grid steps so v7x's two TensorCores both get work; amortize per-step overhead.
    tb = max(16, min(block_b, _round_up(pl.cdiv(B, 2), 16)))
    # Cap so the double-buffered, lane-padded (last dim -> 128) x + f32 out buffers fit VMEM.
    per_row_bytes = 2 * 128 * (x_itemsize + 4)           # 2 buffers * (x + out), lane-padded
    max_tb = (_SAFE_VMEM_BYTES - (2 << 20)) // per_row_bytes
    max_tb = max(16, (max_tb // 16) * 16)
    return min(tb, max_tb)


def mlp_kernel(x_ref, w1_ref, b1_ref, w2_ref, b2_ref, o_ref):
    # x_ref:  (TB, 46) f32/bf16   w1_ref: (46, 32) bf16   b1_ref: (1, 32) f32
    # w2_ref: (32, 8)  bf16       b2_ref: (1, 8)  f32     o_ref:  (TB, 8) f32
    # Cast x in-kernel (VPU, hidden under the x DMA) rather than in the wrapper.
    x = x_ref[...].astype(jnp.bfloat16)
    # fc1 + ReLU: bf16 MXU matmul with f32 accumulation; bias add + ReLU in f32 on the VPU.
    h = jnp.dot(x, w1_ref[...], preferred_element_type=jnp.float32) + b1_ref[...]
    h = jnp.maximum(h, 0.0)
    # fc2: feed the MXU bf16 again, keep the f32 accumulator for the output.
    out = jnp.dot(h.astype(jnp.bfloat16), w2_ref[...],
                  preferred_element_type=jnp.float32) + b2_ref[...]
    o_ref[...] = out.astype(o_ref.dtype)


def _mlp_pallas(x, w1, b1, w2, b2, *, block_b):
    """x: (B, 46) f32 or bf16 (native dtype, uncopied). Returns (B, 8) f32."""
    B = x.shape[0]
    if x.dtype not in (jnp.dtype(jnp.float32), jnp.dtype(jnp.bfloat16)):
        x = x.astype(jnp.float32)

    TB = _choose_tb(B, block_b, x.dtype.itemsize)
    grid = (pl.cdiv(B, TB),)   # ragged last block handled by Pallas (no wrapper pad)

    # Weights are ~6 KB total: casting them once in the wrapper is negligible and keeps the
    # resident VMEM copies bf16 (no per-step recast).  Biases stay f32.
    w1_bf = w1.astype(jnp.bfloat16)
    w2_bf = w2.astype(jnp.bfloat16)
    b1_f = b1.astype(jnp.float32).reshape(1, HIDDEN_SIZE)
    b2_f = b2.astype(jnp.float32).reshape(1, NUM_CLASSES)

    flops = 2 * B * (INPUT_SIZE * HIDDEN_SIZE + HIDDEN_SIZE * NUM_CLASSES)
    bytes_accessed = (
        B * INPUT_SIZE * x.dtype.itemsize                               # x read (native dtype)
        + B * NUM_CLASSES * 4                                           # out (f32) write
        + (INPUT_SIZE * HIDDEN_SIZE + HIDDEN_SIZE * NUM_CLASSES) * 2    # weights (bf16)
        + (HIDDEN_SIZE + NUM_CLASSES) * 4                               # biases (f32)
    )

    # Scoped-VMEM budget: lane-padded double-buffered x + out, plus slack for weights/scratch.
    vmem_bytes = 2 * TB * 128 * (x.dtype.itemsize + 4) + (2 << 20)
    vmem_limit = int(min(max(vmem_bytes, 32 * 1024 * 1024), _SAFE_VMEM_BYTES))

    out = pl.pallas_call(
        mlp_kernel,
        out_shape=jax.ShapeDtypeStruct((B, NUM_CLASSES), jnp.float32),
        grid=grid,
        in_specs=[
            pl.BlockSpec((TB, INPUT_SIZE), lambda i: (i, 0)),
            pl.BlockSpec((INPUT_SIZE, HIDDEN_SIZE), lambda i: (0, 0)),
            pl.BlockSpec((1, HIDDEN_SIZE), lambda i: (0, 0)),
            pl.BlockSpec((HIDDEN_SIZE, NUM_CLASSES), lambda i: (0, 0)),
            pl.BlockSpec((1, NUM_CLASSES), lambda i: (0, 0)),
        ],
        out_specs=pl.BlockSpec((TB, NUM_CLASSES), lambda i: (i, 0)),
        compiler_params=pltpu.CompilerParams(
            dimension_semantics=("parallel",),
            vmem_limit_bytes=vmem_limit,
        ),
        cost_estimate=pl.CostEstimate(
            flops=flops, transcendentals=0, bytes_accessed=bytes_accessed),
    )(x, w1_bf, b1_f, w2_bf, b2_f)

    return out


def mlp_forward(x, w1, b1, w2, b2, *, block_b=16384, force_pallas=False):
    """Matches PyTorch MLP.forward: x.view(-1, 46) -> fc1 -> ReLU -> fc2 (no softmax)."""
    x = x.reshape(-1, INPUT_SIZE)   # no dtype copy: kernel consumes the native dtype
    B = x.shape[0]

    if B < _MIN_PALLAS_BATCH and not force_pallas:
        # Tiny batch: kernel launch + grid-step overhead dominates; plain XLA is faster.
        xf = x.astype(jnp.float32)
        h = jnp.maximum(xf @ w1 + b1.reshape(1, -1), 0.0)
        return h @ w2 + b2.reshape(1, -1)

    return _mlp_pallas(x, w1, b1, w2, b2, block_b=block_b)


def init_params(key):
    # Deterministic init mimicking nn.Linear's U(-1/sqrt(fan_in), 1/sqrt(fan_in)).
    k1, k2, k3, k4 = jax.random.split(key, 4)
    bound1 = 1.0 / jnp.sqrt(jnp.float32(INPUT_SIZE))
    bound2 = 1.0 / jnp.sqrt(jnp.float32(HIDDEN_SIZE))
    w1 = jax.random.uniform(k1, (INPUT_SIZE, HIDDEN_SIZE), jnp.float32, -bound1, bound1)
    b1 = jax.random.uniform(k2, (1, HIDDEN_SIZE), jnp.float32, -bound1, bound1)
    w2 = jax.random.uniform(k3, (HIDDEN_SIZE, NUM_CLASSES), jnp.float32, -bound2, bound2)
    b2 = jax.random.uniform(k4, (1, NUM_CLASSES), jnp.float32, -bound2, bound2)
    return w1, b1, w2, b2


if __name__ == "__main__":
    key = jax.random.PRNGKey(0)
    kx, kx2, kp = jax.random.split(key, 3)
    w1, b1, w2, b2 = init_params(kp)

    def ref_fn(x):
        x = x.reshape(-1, INPUT_SIZE).astype(jnp.float32)
        return jnp.maximum(x @ w1 + b1, 0.0) @ w2 + b2

    # (bf16 in-kernel matmuls, f32 accumulation) vs pure-f32 reference -> loosened tolerance.
    ATOL, RTOL = 3e-2, 3e-2

    # 1) Small-shape check (batch=2): force the Pallas kernel (single whole-array block).
    batch = 2
    x_small = jax.random.normal(kx, (batch, INPUT_SIZE), jnp.float32)
    out_small = mlp_forward(x_small, w1, b1, w2, b2, force_pallas=True)
    jax.block_until_ready(out_small)
    assert out_small.shape == (batch, NUM_CLASSES)
    assert jnp.allclose(out_small, ref_fn(x_small), atol=ATOL, rtol=RTOL)

    # 2) Tiled-path check: batch not divisible by the block size (exercises the ragged last
    #    block and the >=2-step grid), no wrapper-side pad or cast of x.
    big_batch = 1000
    x_big = jax.random.normal(kx2, (big_batch, INPUT_SIZE), jnp.float32)
    out_big = mlp_forward(x_big, w1, b1, w2, b2, block_b=512)
    jax.block_until_ready(out_big)
    assert out_big.shape == (big_batch, NUM_CLASSES)
    assert jnp.allclose(out_big, ref_fn(x_big), atol=ATOL, rtol=RTOL)

    print("KERNEL_OK")
</pallas_src>

<mosaic_0001>
module attributes {stable_mosaic.version = 11 : i64} {
  func.func @mlp_kernel(%arg0: i32, %arg1: memref<2x46xf32, #tpu.memory_space<vmem>>, %arg2: memref<46x32xbf16, #tpu.memory_space<vmem>>, %arg3: memref<1x32xf32, #tpu.memory_space<vmem>>, %arg4: memref<32x8xbf16, #tpu.memory_space<vmem>>, %arg5: memref<1x8xf32, #tpu.memory_space<vmem>>, %arg6: memref<2x8xf32, #tpu.memory_space<vmem>>) attributes {dimension_semantics = [#tpu.dimension_semantics<parallel>], iteration_bounds = array<i64: 1>, scalar_prefetch = 0 : i64, scratch_operands = 0 : i64, tpu.core_type = #tpu.core_type<tc>, window_params = [{transform_indices = @transform_0, window_bounds = array<i64: 2, 46>}, {pipeline_mode = #tpu.pipeline_mode<synchronous>, transform_indices = @transform_1, window_bounds = array<i64: 46, 32>}, {pipeline_mode = #tpu.pipeline_mode<synchronous>, transform_indices = @transform_2, window_bounds = array<i64: 1, 32>}, {pipeline_mode = #tpu.pipeline_mode<synchronous>, transform_indices = @transform_3, window_bounds = array<i64: 32, 8>}, {pipeline_mode = #tpu.pipeline_mode<synchronous>, transform_indices = @transform_4, window_bounds = array<i64: 1, 8>}, {transform_indices = @transform_5, window_bounds = array<i64: 2, 8>}]} {
    %c0 = arith.constant 0 : index
    %c0_0 = arith.constant 0 : index
    %0 = vector.load %arg1[%c0, %c0_0] : memref<2x46xf32, #tpu.memory_space<vmem>>, vector<2x46xf32>
    %1 = arith.truncf %0 : vector<2x46xf32> to vector<2x46xbf16>
    %c0_1 = arith.constant 0 : index
    %c0_2 = arith.constant 0 : index
    %2 = vector.load %arg2[%c0_1, %c0_2] : memref<46x32xbf16, #tpu.memory_space<vmem>>, vector<46x32xbf16>
    %cst = arith.constant dense<0.000000e+00> : vector<2x32xf32>
    %3 = tpu.matmul %1, %2, %cst {dimension_numbers = #tpu.dot_dimension_numbers<[1], [0], [0], [1], [0, 0, 1, 1], [], []>} : vector<2x46xbf16>, vector<46x32xbf16>, vector<2x32xf32> -> vector<2x32xf32>
    %c0_3 = arith.constant 0 : index
    %c0_4 = arith.constant 0 : index
    %4 = vector.load %arg3[%c0_3, %c0_4] : memref<1x32xf32, #tpu.memory_space<vmem>>, vector<1x32xf32>
    %5 = vector.broadcast %4 : vector<1x32xf32> to vector<2x32xf32>
    %6 = arith.addf %3, %5 : vector<2x32xf32>
    %cst_5 = arith.constant 0.000000e+00 : f32
    %7 = vector.broadcast %cst_5 : f32 to vector<2x32xf32>
    %8 = arith.maximumf %6, %7 : vector<2x32xf32>
    %9 = arith.truncf %8 : vector<2x32xf32> to vector<2x32xbf16>
    %c0_6 = arith.constant 0 : index
    %c0_7 = arith.constant 0 : index
    %10 = vector.load %arg4[%c0_6, %c0_7] : memref<32x8xbf16, #tpu.memory_space<vmem>>, vector<32x8xbf16>
    %cst_8 = arith.constant dense<0.000000e+00> : vector<2x8xf32>
    %11 = tpu.matmul %9, %10, %cst_8 {dimension_numbers = #tpu.dot_dimension_numbers<[1], [0], [0], [1], [0, 0, 1, 1], [], []>} : vector<2x32xbf16>, vector<32x8xbf16>, vector<2x8xf32> -> vector<2x8xf32>
    %c0_9 = arith.constant 0 : index
    %c0_10 = arith.constant 0 : index
    %12 = vector.load %arg5[%c0_9, %c0_10] : memref<1x8xf32, #tpu.memory_space<vmem>>, vector<1x8xf32>
    %13 = vector.broadcast %12 : vector<1x8xf32> to vector<2x8xf32>
    %14 = arith.addf %11, %13 : vector<2x8xf32>
    %c0_11 = arith.constant 0 : index
    %c0_12 = arith.constant 0 : index
    %15 = vector.load %arg6[%c0_11, %c0_12] : memref<2x8xf32, #tpu.memory_space<vmem>>, vector<2x8xf32>
    tpu.vector_store %arg6[%c0_11, %c0_12], %14 {strides = array<i32>} : memref<2x8xf32, #tpu.memory_space<vmem>>, vector<2x8xf32>,
    return
  }
  func.func @transform_0(%arg0: i32) -> (i32, i32) {
    %c0_i32 = arith.constant 0 : i32
    %c0_i32_0 = arith.constant 0 : i32
    return %arg0, %c0_i32 : i32, i32
  }
  func.func @transform_1(%arg0: i32) -> (i32, i32) {
    %c0_i32 = arith.constant 0 : i32
    %c0_i32_0 = arith.constant 0 : i32
    %c0_i32_1 = arith.constant 0 : i32
    return %c0_i32, %c0_i32_0 : i32, i32
  }
  func.func @transform_2(%arg0: i32) -> (i32, i32) {
    %c0_i32 = arith.constant 0 : i32
    %c0_i32_0 = arith.constant 0 : i32
    %c0_i32_1 = arith.constant 0 : i32
    return %c0_i32, %c0_i32_0 : i32, i32
  }
  func.func @transform_3(%arg0: i32) -> (i32, i32) {
    %c0_i32 = arith.constant 0 : i32
    %c0_i32_0 = arith.constant 0 : i32
    %c0_i32_1 = arith.constant 0 : i32
    return %c0_i32, %c0_i32_0 : i32, i32
  }
  func.func @transform_4(%arg0: i32) -> (i32, i32) {
    %c0_i32 = arith.constant 0 : i32
    %c0_i32_0 = arith.constant 0 : i32
    %c0_i32_1 = arith.constant 0 : i32
    return %c0_i32, %c0_i32_0 : i32, i32
  }
  func.func @transform_5(%arg0: i32) -> (i32, i32) {
    %c0_i32 = arith.constant 0 : i32
    %c0_i32_0 = arith.constant 0 : i32
    return %arg0, %c0_i32 : i32, i32
  }
}

</mosaic_0001>

<bundles_post_ra>
// kernel: tpu_custom_call.1
= control target key start
LH: loop header
LB: loop body
LE: loop exit
PB: predicated region body
PF: predicated region fallthrough
CT: control target
= control target key end

     0   :  { %vm58_vm0 = vcmask 1046528   ;;  %v251_v0 = vmov 0.0   ;;  %vm252_vm1 = vmmov 0   ;;  %s311_s0 = inlined_call_operand.vmem [shape: f32[2,46], index: 0, kind: input, shape index: {}]   ;;  %s312_s1 = inlined_call_operand.vmem [shape: bf16[46,32], index: 1, kind: input, shape index: {}]   ;;  %s313_s2 = inlined_call_operand.vmem [shape: f32[1,32], index: 2, kind: input, shape index: {}]   ;;  %s314_s3 = inlined_call_operand.vmem [shape: bf16[32,8], index: 3, kind: input, shape index: {}]   ;;  %s315_s4 = inlined_call_operand.vmem [shape: f32[1,8], index: 4, kind: input, shape index: {}]   ;;  %s316_s5 = inlined_call_operand.hbm [shape: f32[2,8], index: 5, kind: output, shape index: {}]  }
   0x1   :  { %203 = vmatprep.subr.bf16.mxu0 %v251_v0  ;;  %v224_v1 = vld [vmem:[%s312_s1 + $0x10] sm:$0x7f]   ;;  %213 = vmatprep.subr.bf16.mxu1 %v251_v0  ;;  %v225_v3 = vld [vmem:[%s312_s1 + $0x8] sm:$0xff]  }
   0x2   :  { %v60_v2 = vsel %vm58_vm0, %v224_v1, 0  ;;  %209 = vmatprep.mubr.msk.bf16.mxu0 %vm252_vm1, %v251_v0  ;;  %217 = vmatprep.mubr.msk.bf16.mxu1 %vm252_vm1, %v251_v0 }
   0x3   :  { %204 = vmatpush3.bf16.msra.mxu0 %v60_v2 }
   0x4   :  { %205 = vmatprep.subr.bf16.mxu0 %v251_v0 }
   0x5   :  { %10 = vsyncpa [#allocation3], 0  ;;  %v226_v4 = vld [vmem:[%s312_s1] sm:$0xff]   ;;  %vm54_vm2 = vcmask 375808   ;;  %v227_v7 = vld [vmem:[%s314_s3 + $0x8] sm:$0xff]   ;;  %vm127_vm3 = vcmask 261120  }
   0x6   :  { %v22_v5 = vld [vmem:[%s311_s0] sm:$0x3]  ;;  %214 = vmatpush3.bf16.msra.mxu1 %v227_v7  ;;  %s253_s7 = smov [#allocation2]   ;;  %vm171_vm4 = vcmask 58368  }
   0x7   :  { %206 = vmatpush3.bf16.msra.mxu0 %v225_v3  ;;  %v23_v6 = vpack.c.bf16 %v22_v5, %v22_v5  ;;  %215 = vmatprep.subr.bf16.mxu1 %v251_v0  ;;  %v228_v8 = vld [vmem:[%s314_s3] sm:$0xff]   ;;  %s179_s3 = sshll.u32 %s253_s7, 4  ;;  %s180_s3 = int_to_ptr.vmem [resolvable:$true] %s179_s3 }
   0x8   :  { %207 = vmatprep.subr.bf16.mxu0 %v251_v0  ;;  %v187_v9 = vld [vmem:[%s313_s2] ss:$0 sm:$0xff]  ;;  %s229_s2 = scalar_lea.vmem %s180_s3, 32  ;;  %p234_p1 = scmp.lt.s32.totalorder %s180_s3, %s180_s3 }
   0x9   :  { %v192_v17 = vld [vmem:[%s315_s4] ss:$0 sm:$0xff]  ;;  %p230_p0 = scmp.ne.s32.totalorder %s180_s3, %s229_s2  ;;  %p235_p2 = scmp.lt.s32.totalorder %s229_s2, %s229_s2 }
   0xa   :  { %216 = vmatpush3.bf16.msra.mxu1 %v228_v8 }
   0xb   :  { %208 = vmatpush3.bf16.msra.mxu0 %v226_v4  ;;  %p236_p3 = por %p235_p2, %p234_p1 }
   0xd   :  { %p237_p4 = pnand %p236_p3, %p230_p0 }
   0xe   :  { %210 = vmatmul.mubr.msk.bf16.vlgmr.msra.gmra.mxu0 %vm54_vm2, %v23_v6 }
  0xce   :  { %v96_v10 = vpop.f32.mrf.mxu0 }
  0xcf   :  { %v97_v11 = vadd.f32 %v187_v9, %v96_v10 }
  0xd0   :  { %v211_v12 = vpop.f32.mrf.mxu0 }
  0xd1   :  { %v102_v13 = vmax.f32 %v97_v11, 0.0 }
  0xd2   :  { %v99_v14 = vpop.f32.mrf.mxu0 }
  0xd3   :  { %v103_v15 = vpack.c.bf16 %v102_v13, %v102_v13 }
  0xd4   :  { %v212_v16 = vpop.f32.mrf.mxu0 }
  0xd5   :  { %218 = vmatmul.mubr.msk.bf16.vlgmr.msra.gmra.mxu1 %vm127_vm3, %v103_v15 }
 0x195   :  { %v165_v18 = vpop.f32.mrf.mxu1 }
 0x196   :  { %v166_v19 = vadd.f32 %v192_v17, %v165_v18 }
 0x197   :  { %v219_v20 = vpop.f32.mrf.mxu1 }
 0x198   :  { %172 = vst.msk [vmem:[#allocation2] sm:$0x3] %vm171_vm4, %v166_v19 }
 0x199   :  { %v168_v21 = vpop.f32.mrf.mxu1 }
 0x19a   :  { %240 = shalt.err (!%p237_p4)
}
 0x19b   :  { %182 = dma.vmem_to_hbm [thread:$0]  %s180_s3, 32, %s316_s5, [#allocation3]   ;;  %v220_v22 = vpop.f32.mrf.mxu1 }
 0x19c   :  { %249 = dma.done.wait [#allocation3], 32  }
 0x19d   :  { %250 = vsyncadd [#allocation3], 4294967264 }
 0x19e   :  { %186 = vsyncpa [#allocation3], 1 }

</bundles_post_ra>
